<compile_context>
chip_gen: v6e
topology: v6e:2x2x1
jax: 0.10.0
libtpu: 0.0.40
codegen_flags: <defaults>
</compile_context>

<pallas_src>
import functools

import jax
import jax.numpy as jnp
from jax.experimental import pallas as pl
from jax.experimental.pallas import tpu as pltpu


def daft_kernel(fm_ref, xaux_ref, w1i_ref, w1a_ref, w2p_ref,
                out_ref, pool_acc, *, inv_hw, n_lane_chunks, c_pad):
    """Grid = (batch_tiles, hw_tiles); hw axis is the reduction.

    fm_ref   : (bt, C, hw_t)        streamed image feature-map tile
    xaux_ref : (bt, T, F)           EHR series (revisited per batch tile)
    w1i_ref  : (C, bottleneck)      aux_base weight, image half (transposed)
    w1a_ref  : (F, bottleneck)      aux_base weight, ehr half  (transposed)
    w2p_ref  : (bottleneck, 2*Cpad) aux_out weight, scale head at lane 0,
                                    shift head at lane c_pad (zero-padded)
    out_ref  : (bt, T, F)
    pool_acc : (bt, C, 128) f32     lane-wide spatial-sum accumulator
    """
    j = pl.program_id(1)

    @pl.when(j == 0)
    def _init():
        pool_acc[...] = jnp.zeros_like(pool_acc)

    # Streaming phase: pure elementwise (VPU) adds into the lane-wide
    # accumulator.  Each slice is a whole lane tile (128-aligned start/width),
    # and the cast is per-chunk, so no full-tile f32 temporary for bf16 fm.
    acc = pool_acc[...]
    for k in range(n_lane_chunks):
        acc = acc + fm_ref[:, :, k * 128:(k + 1) * 128].astype(jnp.float32)
    pool_acc[...] = acc

    @pl.when(j == pl.num_programs(1) - 1)
    def _epilogue():
        C = pool_acc.shape[1]
        # Single cross-lane reduce + scale: AdaptiveAvgPool2d(1).
        pool = jnp.sum(pool_acc[...], axis=-1) * inv_hw          # (bt, C)
        xaux = xaux_ref[...].astype(jnp.float32)                 # (bt, T, F)
        ehr_avg = jnp.mean(xaux, axis=1)                         # torch.mean(x_aux, 1)

        # cat((pool, ehr_avg), 1) @ W1.T == pool @ W1i + ehr_avg @ W1a
        h = (jnp.dot(pool, w1i_ref[...], preferred_element_type=jnp.float32)
             + jnp.dot(ehr_avg, w1a_ref[...], preferred_element_type=jnp.float32))
        h = jnp.maximum(h, 0.0)                                  # aux_relu

        # Fused aux_out: one MXU dot; heads split at lane-128-aligned offsets.
        att = jnp.dot(h, w2p_ref[...], preferred_element_type=jnp.float32)
        v_scale = att[:, :C]
        v_shift = att[:, c_pad:c_pad + C]

        # activation == 'linear' -> no scale_activation.
        out = v_scale[:, None, :] * xaux + v_shift[:, None, :]
        out_ref[...] = out.astype(out_ref.dtype)


def _round_up(x, m):
    return ((x + m - 1) // m) * m


def _largest_divisor_leq(n, cap):
    for d in range(min(n, cap), 0, -1):
        if n % d == 0:
            return d
    return 1


def _pick_bt(b, max_bt=32):
    """Batch tile: divisor of B, keeping >= 2 parallel programs when B >= 2
    (v7x has 2 TensorCores), and growing up to max_bt for large B."""
    if b <= 1:
        return 1
    cap = min(max_bt, max(1, b // 2))
    return _largest_divisor_leq(b, cap)


def daft_block(feature_map, x_aux, w1, w2, *,
               fm_block_budget_bytes=4 << 20, max_lane_chunks=128):
    """Pallas wrapper.

    feature_map : (B, C, H, W)  NCHW, as in PyTorch
    x_aux       : (B, T, F)     with F == C (module semantics)
    w1          : (bottleneck, C + F)  aux_base.weight (torch Linear layout)
    w2          : (2*C, bottleneck)    aux_out.weight  (torch Linear layout)
    """
    B, C, H, W = feature_map.shape
    _, T, F = x_aux.shape
    assert F == C, "module semantics require in_channels == ndim_non_img"
    bottleneck = w1.shape[0]
    HW = H * W

    fm = feature_map.reshape(B, C, HW)
    itemsize = jnp.dtype(fm.dtype).itemsize

    # ---- Host-side weight prep ------------------------------------------------
    w1t = w1.T                    # (C + F, bottleneck)
    w1i = w1t[:C]                 # (C, bottleneck)  image half
    w1a = w1t[C:]                 # (F, bottleneck)  ehr half
    c_pad = _round_up(C, 128)
    w2p = jnp.zeros((bottleneck, 2 * c_pad), dtype=w2.dtype)
    w2p = w2p.at[:, :C].set(w2[:C].T)                 # scale head @ lane 0
    w2p = w2p.at[:, c_pad:c_pad + C].set(w2[C:2 * C].T)  # shift head @ lane c_pad

    # ---- Tiling ---------------------------------------------------------------
    bt = _pick_bt(B)
    row_bytes = bt * C * itemsize
    lanes = max(128, (fm_block_budget_bytes // max(row_bytes, 1)) // 128 * 128)
    lanes = min(lanes, max_lane_chunks * 128)         # bound in-kernel unroll
    hw_t = min(lanes, _round_up(HW, 128))             # multiple of 128 always
    hw_pad = _round_up(HW, hw_t)
    if hw_pad != HW:
        # Zero-pad the spatial axis: zeros add nothing to the pool sum and
        # inv_hw keeps the true H*W, so numerics are unchanged while the
        # block budget (and VMEM) is always honored.
        fm = jnp.pad(fm, ((0, 0), (0, 0), (0, hw_pad - HW)))
    grid = (B // bt, hw_pad // hw_t)
    n_chunks = hw_t // 128

    kernel = functools.partial(daft_kernel, inv_hw=1.0 / float(HW),
                               n_lane_chunks=n_chunks, c_pad=c_pad)

    cost = pl.CostEstimate(
        flops=(B * C * hw_pad                  # pooling adds
               + 2 * B * (C + F) * bottleneck  # aux_base
               + 2 * B * bottleneck * 2 * c_pad  # aux_out (packed)
               + 2 * B * T * F),               # FiLM apply
        transcendentals=0,
        bytes_accessed=(fm.size * itemsize
                        + 2 * x_aux.size * jnp.dtype(x_aux.dtype).itemsize
                        + (w1i.size + w1a.size + w2p.size) * jnp.dtype(w1.dtype).itemsize),
    )

    return pl.pallas_call(
        kernel,
        out_shape=jax.ShapeDtypeStruct((B, T, F), x_aux.dtype),
        grid_spec=pltpu.PrefetchScalarGridSpec(
            num_scalar_prefetch=0,
            grid=grid,
            in_specs=[
                # fm stream; if profiling on v5e shows exposed DMA at tiny
                # tiles, raise buffering via pipeline_mode=pl.Buffered(3) here.
                pl.BlockSpec((bt, C, hw_t), lambda i, j: (i, 0, j)),
                pl.BlockSpec((bt, T, F), lambda i, j: (i, 0, 0)),        # x_aux
                pl.BlockSpec((C, bottleneck), lambda i, j: (0, 0)),      # w1 img half
                pl.BlockSpec((F, bottleneck), lambda i, j: (0, 0)),      # w1 ehr half
                pl.BlockSpec((bottleneck, 2 * c_pad), lambda i, j: (0, 0)),  # w2 packed
            ],
            out_specs=pl.BlockSpec((bt, T, F), lambda i, j: (i, 0, 0)),
            scratch_shapes=[pltpu.VMEM((bt, C, 128), jnp.float32)],
        ),
        compiler_params=pltpu.CompilerParams(
            dimension_semantics=("parallel", "arbitrary"),
            vmem_limit_bytes=32 << 20,
        ),
        cost_estimate=cost,
    )(fm, x_aux, w1i, w1a, w2p)


def daft_ref(feature_map, x_aux, w1, w2):
    """Pure-JAX reference mirroring the PyTorch forward exactly."""
    B, C, H, W = feature_map.shape
    pool = feature_map.mean(axis=(2, 3))                       # global_pool + view
    ehr_avg = x_aux.mean(axis=1)
    squeeze = jnp.concatenate([pool, ehr_avg], axis=1)
    att = jnp.maximum(squeeze @ w1.T, 0.0) @ w2.T
    v_scale, v_shift = att[:, :C], att[:, C:]
    return v_scale[:, None, :] * x_aux + v_shift[:, None, :]


if __name__ == "__main__":
    # Module defaults: ndim_non_img=15, bottleneck_dim=7, scale=shift=True,
    # activation='linear'.  in_channels must equal ndim_non_img (=15).
    NDIM_NON_IMG = 15
    BOTTLENECK = 7

    key = jax.random.PRNGKey(0)
    k_fm, k_aux, k_w1, k_w2, k_fm2, k_aux2, k_fm3, k_aux3 = jax.random.split(key, 8)

    C = NDIM_NON_IMG
    F = NDIM_NON_IMG
    w1 = 0.1 * jax.random.normal(k_w1, (BOTTLENECK, NDIM_NON_IMG + C), dtype=jnp.float32)
    w2 = 0.1 * jax.random.normal(k_w2, (2 * C, BOTTLENECK), dtype=jnp.float32)

    # --- Test 1: small canonical shape (single HW tile, 2 batch programs) ----
    B, H, W, T = 2, 16, 16, 8
    feature_map = jax.random.normal(k_fm, (B, C, H, W), dtype=jnp.float32)
    x_aux = jax.random.normal(k_aux, (B, T, F), dtype=jnp.float32)

    out = jax.block_until_ready(daft_block(feature_map, x_aux, w1, w2))
    ref = daft_ref(feature_map, x_aux, w1, w2)
    assert out.shape == (B, T, F)
    assert jnp.allclose(out, ref, atol=1e-5, rtol=1e-5), "mismatch vs reference (test 1)"

    # --- Test 2: larger spatial extent, tiny budget -> multi-step HW reduction
    # (accumulator + epilogue) with 2 parallel batch programs. -----------------
    B2, H2, W2, T2 = 4, 32, 32, 8
    feature_map2 = jax.random.normal(k_fm2, (B2, C, H2, W2), dtype=jnp.float32)
    x_aux2 = jax.random.normal(k_aux2, (B2, T2, F), dtype=jnp.float32)

    out2 = jax.block_until_ready(
        daft_block(feature_map2, x_aux2, w1, w2, fm_block_budget_bytes=64 * 1024))
    ref2 = daft_ref(feature_map2, x_aux2, w1, w2)
    assert out2.shape == (B2, T2, F)
    assert jnp.allclose(out2, ref2, atol=1e-5, rtol=1e-5), "mismatch vs reference (test 2)"

    # --- Test 3: non-128-divisible HW (18x18=324) + odd batch -> exercises the
    # zero-padding path and the multi-step reduction with padded tail. ---------
    B3, H3, W3, T3 = 3, 18, 18, 8
    feature_map3 = jax.random.normal(k_fm3, (B3, C, H3, W3), dtype=jnp.float32)
    x_aux3 = jax.random.normal(k_aux3, (B3, T3, F), dtype=jnp.float32)

    out3 = jax.block_until_ready(
        daft_block(feature_map3, x_aux3, w1, w2, fm_block_budget_bytes=16 * 1024))
    ref3 = daft_ref(feature_map3, x_aux3, w1, w2)
    assert out3.shape == (B3, T3, F)
    assert jnp.allclose(out3, ref3, atol=1e-5, rtol=1e-5), "mismatch vs reference (test 3)"

    print("KERNEL_OK")
</pallas_src>

<mosaic_0001>
module attributes {stable_mosaic.version = 11 : i64} {
  func.func @daft_kernel(%arg0: i32, %arg1: i32, %arg2: memref<1x15x256xf32, #tpu.memory_space<vmem>>, %arg3: memref<1x8x15xf32, #tpu.memory_space<vmem>>, %arg4: memref<15x7xf32, #tpu.memory_space<vmem>>, %arg5: memref<15x7xf32, #tpu.memory_space<vmem>>, %arg6: memref<7x256xf32, #tpu.memory_space<vmem>>, %arg7: memref<1x8x15xf32, #tpu.memory_space<vmem>>, %arg8: memref<1x15x128xf32, #tpu.memory_space<vmem>>) attributes {dimension_semantics = [#tpu.dimension_semantics<parallel>, #tpu.dimension_semantics<arbitrary>], iteration_bounds = array<i64: 2, 1>, scalar_prefetch = 0 : i64, scratch_operands = 1 : i64, tpu.core_type = #tpu.core_type<tc>, window_params = [{transform_indices = @transform_0, window_bounds = array<i64: 1, 15, 256>}, {transform_indices = @transform_1, window_bounds = array<i64: 1, 8, 15>}, {pipeline_mode = #tpu.pipeline_mode<synchronous>, transform_indices = @transform_2, window_bounds = array<i64: 15, 7>}, {pipeline_mode = #tpu.pipeline_mode<synchronous>, transform_indices = @transform_3, window_bounds = array<i64: 15, 7>}, {pipeline_mode = #tpu.pipeline_mode<synchronous>, transform_indices = @transform_4, window_bounds = array<i64: 7, 256>}, {transform_indices = @transform_5, window_bounds = array<i64: 1, 8, 15>}]} {
    %c0_i32 = arith.constant 0 : i32
    %0 = arith.cmpi eq, %arg1, %c0_i32 : i32
    %1 = arith.extui %0 : i1 to i32
    %c0_i32_0 = arith.constant 0 : i32
    %2 = arith.cmpi ne, %1, %c0_i32_0 : i32
    scf.if %2 {
      %cst = arith.constant 0.000000e+00 : f32
      %12 = vector.broadcast %cst : f32 to vector<1x15x128xf32>
      %c0_13 = arith.constant 0 : index
      %c0_14 = arith.constant 0 : index
      %c0_15 = arith.constant 0 : index
      %13 = vector.load %arg8[%c0_13, %c0_14, %c0_15] : memref<1x15x128xf32, #tpu.memory_space<vmem>>, vector<1x15x128xf32>
      tpu.vector_store %arg8[%c0_13, %c0_14, %c0_15], %12 {strides = array<i32>} : memref<1x15x128xf32, #tpu.memory_space<vmem>>, vector<1x15x128xf32>,
    } else {
    }
    %c0 = arith.constant 0 : index
    %c0_1 = arith.constant 0 : index
    %c0_2 = arith.constant 0 : index
    %3 = vector.load %arg8[%c0, %c0_1, %c0_2] : memref<1x15x128xf32, #tpu.memory_space<vmem>>, vector<1x15x128xf32>
    %c0_3 = arith.constant 0 : index
    %c0_4 = arith.constant 0 : index
    %c0_5 = arith.constant 0 : index
    %4 = vector.load %arg2[%c0_3, %c0_4, %c0_5] : memref<1x15x256xf32, #tpu.memory_space<vmem>>, vector<1x15x128xf32>
    %5 = arith.addf %3, %4 : vector<1x15x128xf32>
    %c0_6 = arith.constant 0 : index
    %c0_7 = arith.constant 0 : index
    %c128 = arith.constant 128 : index
    %6 = vector.load %arg2[%c0_6, %c0_7, %c128] : memref<1x15x256xf32, #tpu.memory_space<vmem>>, vector<1x15x128xf32>
    %7 = arith.addf %5, %6 : vector<1x15x128xf32>
    %c0_8 = arith.constant 0 : index
    %c0_9 = arith.constant 0 : index
    %c0_10 = arith.constant 0 : index
    %8 = vector.load %arg8[%c0_8, %c0_9, %c0_10] : memref<1x15x128xf32, #tpu.memory_space<vmem>>, vector<1x15x128xf32>
    tpu.vector_store %arg8[%c0_8, %c0_9, %c0_10], %7 {strides = array<i32>} : memref<1x15x128xf32, #tpu.memory_space<vmem>>, vector<1x15x128xf32>,
    %c0_i32_11 = arith.constant 0 : i32
    %9 = arith.cmpi eq, %arg1, %c0_i32_11 : i32
    %10 = arith.extui %9 : i1 to i32
    %c0_i32_12 = arith.constant 0 : i32
    %11 = arith.cmpi ne, %10, %c0_i32_12 : i32
    scf.if %11 {
      %c0_13 = arith.constant 0 : index
      %c0_14 = arith.constant 0 : index
      %c0_15 = arith.constant 0 : index
      %12 = vector.load %arg8[%c0_13, %c0_14, %c0_15] : memref<1x15x128xf32, #tpu.memory_space<vmem>>, vector<1x15x128xf32>
      %cst = arith.constant dense<0.000000e+00> : vector<1x15xf32>
      %13 = vector.multi_reduction <add>, %12, %cst [2] : vector<1x15x128xf32> to vector<1x15xf32>
      %cst_16 = arith.constant 3.906250e-03 : f32
      %14 = vector.broadcast %cst_16 : f32 to vector<1x15xf32>
      %15 = arith.mulf %13, %14 : vector<1x15xf32>
      %c0_17 = arith.constant 0 : index
      %c0_18 = arith.constant 0 : index
      %c0_19 = arith.constant 0 : index
      %16 = vector.load %arg3[%c0_17, %c0_18, %c0_19] : memref<1x8x15xf32, #tpu.memory_space<vmem>>, vector<1x8x15xf32>
      %cst_20 = arith.constant dense<0.000000e+00> : vector<1x15xf32>
      %17 = vector.multi_reduction <add>, %16, %cst_20 [1] : vector<1x8x15xf32> to vector<1x15xf32>
      %cst_21 = arith.constant 8.000000e+00 : f32
      %18 = vector.broadcast %cst_21 : f32 to vector<1x15xf32>
      %19 = arith.divf %17, %18 : vector<1x15xf32>
      %c0_22 = arith.constant 0 : index
      %c0_23 = arith.constant 0 : index
      %20 = vector.load %arg4[%c0_22, %c0_23] : memref<15x7xf32, #tpu.memory_space<vmem>>, vector<15x7xf32>
      %cst_24 = arith.constant dense<0.000000e+00> : vector<1x7xf32>
      %21 = tpu.matmul %15, %20, %cst_24 {dimension_numbers = #tpu.dot_dimension_numbers<[1], [0], [0], [1], [0, 0, 1, 1], [], []>} : vector<1x15xf32>, vector<15x7xf32>, vector<1x7xf32> -> vector<1x7xf32>
      %c0_25 = arith.constant 0 : index
      %c0_26 = arith.constant 0 : index
      %22 = vector.load %arg5[%c0_25, %c0_26] : memref<15x7xf32, #tpu.memory_space<vmem>>, vector<15x7xf32>
      %cst_27 = arith.constant dense<0.000000e+00> : vector<1x7xf32>
      %23 = tpu.matmul %19, %22, %cst_27 {dimension_numbers = #tpu.dot_dimension_numbers<[1], [0], [0], [1], [0, 0, 1, 1], [], []>} : vector<1x15xf32>, vector<15x7xf32>, vector<1x7xf32> -> vector<1x7xf32>
      %24 = arith.addf %21, %23 : vector<1x7xf32>
      %cst_28 = arith.constant 0.000000e+00 : f32
      %25 = vector.broadcast %cst_28 : f32 to vector<1x7xf32>
      %26 = arith.maximumf %24, %25 : vector<1x7xf32>
      %c0_29 = arith.constant 0 : index
      %c0_30 = arith.constant 0 : index
      %27 = vector.load %arg6[%c0_29, %c0_30] : memref<7x256xf32, #tpu.memory_space<vmem>>, vector<7x256xf32>
      %cst_31 = arith.constant dense<0.000000e+00> : vector<1x256xf32>
      %28 = tpu.matmul %26, %27, %cst_31 {dimension_numbers = #tpu.dot_dimension_numbers<[1], [0], [0], [1], [0, 0, 1, 1], [], []>} : vector<1x7xf32>, vector<7x256xf32>, vector<1x256xf32> -> vector<1x256xf32>
      %29 = vector.extract_strided_slice %28 {offsets = [0, 0], sizes = [1, 15], strides = [1, 1]} : vector<1x256xf32> to vector<1x15xf32>
      %30 = vector.extract_strided_slice %28 {offsets = [0, 128], sizes = [1, 15], strides = [1, 1]} : vector<1x256xf32> to vector<1x15xf32>
      %31 = vector.shape_cast %29 : vector<1x15xf32> to vector<1x1x15xf32>
      %32 = vector.broadcast %31 : vector<1x1x15xf32> to vector<1x8x15xf32>
      %33 = arith.mulf %32, %16 : vector<1x8x15xf32>
      %34 = vector.shape_cast %30 : vector<1x15xf32> to vector<1x1x15xf32>
      %35 = vector.broadcast %34 : vector<1x1x15xf32> to vector<1x8x15xf32>
      %36 = arith.addf %33, %35 : vector<1x8x15xf32>
      %c0_32 = arith.constant 0 : index
      %c0_33 = arith.constant 0 : index
      %c0_34 = arith.constant 0 : index
      %37 = vector.load %arg7[%c0_32, %c0_33, %c0_34] : memref<1x8x15xf32, #tpu.memory_space<vmem>>, vector<1x8x15xf32>
      tpu.vector_store %arg7[%c0_32, %c0_33, %c0_34], %36 {strides = array<i32>} : memref<1x8x15xf32, #tpu.memory_space<vmem>>, vector<1x8x15xf32>,
    } else {
    }
    return
  }
  func.func @transform_0(%arg0: i32, %arg1: i32) -> (i32, i32, i32) {
    %c0_i32 = arith.constant 0 : i32
    %c0_i32_0 = arith.constant 0 : i32
    return %arg0, %c0_i32, %arg1 : i32, i32, i32
  }
  func.func @transform_1(%arg0: i32, %arg1: i32) -> (i32, i32, i32) {
    %c0_i32 = arith.constant 0 : i32
    %c0_i32_0 = arith.constant 0 : i32
    %c0_i32_1 = arith.constant 0 : i32
    return %arg0, %c0_i32, %c0_i32_0 : i32, i32, i32
  }
  func.func @transform_2(%arg0: i32, %arg1: i32) -> (i32, i32) {
    %c0_i32 = arith.constant 0 : i32
    %c0_i32_0 = arith.constant 0 : i32
    %c0_i32_1 = arith.constant 0 : i32
    return %c0_i32, %c0_i32_0 : i32, i32
  }
  func.func @transform_3(%arg0: i32, %arg1: i32) -> (i32, i32) {
    %c0_i32 = arith.constant 0 : i32
    %c0_i32_0 = arith.constant 0 : i32
    %c0_i32_1 = arith.constant 0 : i32
    return %c0_i32, %c0_i32_0 : i32, i32
  }
  func.func @transform_4(%arg0: i32, %arg1: i32) -> (i32, i32) {
    %c0_i32 = arith.constant 0 : i32
    %c0_i32_0 = arith.constant 0 : i32
    %c0_i32_1 = arith.constant 0 : i32
    return %c0_i32, %c0_i32_0 : i32, i32
  }
  func.func @transform_5(%arg0: i32, %arg1: i32) -> (i32, i32, i32) {
    %c0_i32 = arith.constant 0 : i32
    %c0_i32_0 = arith.constant 0 : i32
    %c0_i32_1 = arith.constant 0 : i32
    return %arg0, %c0_i32, %c0_i32_0 : i32, i32, i32
  }
}

</mosaic_0001>

<bundles_post_ra>
// kernel: tpu_custom_call.1
= control target key start
LH: loop header
LB: loop body
LE: loop exit
PB: predicated region body
PF: predicated region fallthrough
CT: control target
= control target key end

     0   :  { %10 = vsyncpa [#allocation4], 0  ;;  %s1016_s0 = inlined_call_operand.vmem [shape: f32[2,15,256], index: 0, kind: input, shape index: {}]   ;;  %s1017_s1 = inlined_call_operand.vmem [shape: f32[2,8,15], index: 1, kind: input, shape index: {}]   ;;  %s1018_s2 = inlined_call_operand.vmem [shape: f32[15,7], index: 2, kind: input, shape index: {}]   ;;  %s1019_s3 = inlined_call_operand.vmem [shape: f32[15,7], index: 3, kind: input, shape index: {}]   ;;  %s1020_s4 = inlined_call_operand.vmem [shape: f32[7,256], index: 4, kind: input, shape index: {}]   ;;  %s1021_s5 = inlined_call_operand.hbm [shape: f32[2,8,15], index: 5, kind: output, shape index: {}]  }
   0x1   :  { %12 = vsyncpa [#allocation4 + $0x1], 0  ;;  %s883_s18 = smov 0   ;;  %s885_s19 = smov 0  }
   0x2   :  { %s887_s20 = smov 0   ;;  %s889_s21 = smov 0  }
   0x3   :  { %s891_s22 = smov 0   ;;  %s893_s23 = smov 0  }
   0x4 LB: > { %s674_s24 = sadd.s32 4294967295, %s848_s23   ;;  %s675_s25 = sadd.s32 4294967294, %s848_s23   ;;  %s848_s23 = sphi %s893_s23, %s18_s23   ;;  %s844_s22 = sphi %s891_s22, %s1028_s22   ;;  %s840_s21 = sphi %s889_s21, %s1027_s21   ;;  %s836_s20 = sphi %s887_s20, %s1026_s20   ;;  %s832_s19 = sphi %s885_s19, %s1025_s19   ;;  %s828_s18 = sphi %s883_s18, %s1024_s18  }
   0x5   : > { %s30_s26 = sadd.s32 1, %s844_s22  ;;  %s154_s27 = sadd.s32 1, %s836_s20 }
   0x6   : > { %p32_p0 = scmp.ge.s32.totalorder %s30_s26, 2  ;;  %p164_p1 = scmp.ne.s32.totalorder %s836_s20, %s832_s19 }
   0x7   : > { %p165_p2 = scmp.eq.s32.totalorder %s674_s24, 1  ;;  %p170_p3 = scmp.ne.s32.totalorder %s832_s19, %s828_s18 }
   0x8   : > { %s1030_s26 = smov (%p32_p0, %s30_s26), 0  ;;  %p171_p5 = scmp.eq.s32.totalorder %s675_s25, 1 }
   0x9   : > { %p923_p4 = por %p165_p2, %p164_p1  ;;  %s151_s29 = ssub.s32 %s844_s22, %s1030_s26 }
   0xa   : > { %p678_p6 = scmp.ge.s32.totalorder %s848_s23, 1  ;;  %p152_p7 = scmp.eq.s32.totalorder %s151_s29, 0 }
   0xb   : > { %p930_p8 = por %p171_p5, %p170_p3  ;;  %p218_p9 = scmp.lt.s32.totalorder %s848_s23, 3 }
   0xc   : > { %s936_s6 = scalar_select %p152_p7, %s836_s20, %s154_s27  }
   0xd   : > { %p219_p10 = pnand %p678_p6, %p218_p9 }
   0xe   : > { %p255_p11 = scmp.lt.s32.totalorder (!%p219_p10), %s840_s21, 1  ;;  %s251_s13 = sand.u32 (!%p219_p10), 1, %s832_s19  }
   0xf   : > { %222 = sbr.rel (%p219_p10) target bundleno = 594 (0x252), region = 40  ;;  %s679_s14 = sshll.u32 (!%p219_p10), %s251_s13, 3 }
  0x10   : > { %s253_s16 = scalar_lea.vmem (!%p219_p10), [#allocation3], %s679_s14  ;;  %s576_s29 = scalar_lea.sflag (!%p219_p10), [#allocation4], %s251_s13 }
  0x11   : > { %s589_s17 = sshll.u32 (!%p219_p10), %s253_s16, 4  ;;  %s590_s17 = int_to_ptr.vmem [resolvable:$true] %s589_s17 }
  0x14   : > { %v850_v0 = vmov 0.0   ;;  %s256_s7 = scalar_select %p255_p11, %s840_s21, 1  ;;  %vm293_vm0 = vcmask 1046528   ;;  %vm300_vm1 = vcmask 121856   ;;  %v313_v18 = vld [vmem:[%s1019_s3 + $0x8] sm:$0x7f]  ;;  %v392_v24 = vlaneseq }
  0x15   : > { %273 = vst [vmem:[#allocation2 + $0x8] sm:$0x7f] %v850_v0  ;;  %701 = vmatprep.subr.mxu0 %v850_v0  ;;  %708 = vmatprep.subr.mxu1 %v850_v0  ;;  %v312_v20 = vld [vmem:[%s1019_s3] sm:$0xff]  ;;  %v311_v21 = vld [vmem:[%s1018_s2 + $0x8] sm:$0x7f]  ;;  %vm851_vm2 = vmmov 0  }
  0x16   : > { %s694_s8 = sshll.u32 %s256_s7, 5  ;;  %s682_s12 = sshll.u32 %s256_s7, 3  ;;  %702 = vmatpush3.msk.msra.mxu0 %vm293_vm0, %v313_v18  ;;  %705 = vmatprep.mubr.msk.f32.mxu0 %vm851_vm2, %v850_v0  ;;  %v310_v23 = vld [vmem:[%s1018_s2] sm:$0xff]  ;;  %v393_v25 = vand.u32 127, %v392_v24  ;;  %v395_v27 = vshrl.u32 %v392_v24, 7  ;;  %vm403_vm3 = vcmask 130112  }
  0x17   : > { %s262_s11 = scalar_lea.vmem %s1016_s0, %s694_s8  ;;  %s267_s15 = scalar_lea.vmem %s1017_s1, %s682_s12  ;;  %703 = vmatprep.subr.mxu0 %v850_v0  ;;  %709 = vmatpush3.msk.msra.mxu1 %vm293_vm0, %v311_v21  ;;  %v482_v39 = vld [vmem:[%s1020_s4 + $0x8] sm:$0x7f]  ;;  %v481_v40 = vld [vmem:[%s1020_s4] sm:$0x7f]  ;;  %vm483_vm4 = vcmask 56320  }
  0x18   : > { %v276_v1 = vld [vmem:[%s262_s11] sm:$0xff]  ;;  %v280_v2 = vld [vmem:[%s262_s11 + $0x8] sm:$0xff]  ;;  %v277_v3 = vld [vmem:[%s262_s11 + $0x10] sm:$0x7f]  ;;  %704 = vmatpush3.msra.mxu0 %v312_v20  ;;  %710 = vmatprep.subr.mxu1 %v850_v0  ;;  %v398_v28 = vadd.s32 4294967288, %v393_v25  ;;  %v396_v29 = vsub.s32 %v393_v25, %v395_v27  ;;  %v566_v45 = vsub.s32 0, %v395_v27 }
  0x19   : > { %v281_v5 = vld [vmem:[%s262_s11 + $0x18] sm:$0x7f]  ;;  %v282_v6 = vadd.f32 %v280_v2, %v276_v1  ;;  %v946_v9 = vld [vmem:[%s267_s15] sm:$0xff]  ;;  %712 = vmatprep.mubr.msk.f32.mxu1 %vm851_vm2, %v850_v0  ;;  %711 = vmatpush3.msra.mxu1 %v310_v23  ;;  %s691_s15 = sshll.u32 %s840_s21, 7  ;;  %s772_s7 = scalar_lea.vmem %s590_s17, 128 }
  0x1a   : > { %v301_v11 = vsel %vm300_vm1, %v946_v9, 0.0  ;;  %v401_v31 = vsub.s32 %v398_v28, %v395_v27  ;;  %687 = vmatprep.subr.msk.mxu0 %vm293_vm0, %v482_v39  ;;  %s587_s27 = scalar_lea.hbm %s1021_s5, %s691_s15  ;;  %p773_p12 = scmp.ne.s32.totalorder %s590_s17, %s772_s7 }
  0x1b   : > { %291 = vadd.xlane.f32.xlu0 %v282_v6  ;;  %v302_v13 = vrot.slane %v301_v11, 4  ;;  %s852_s21 = smov [#allocation3]  }
  0x1c   : > { %v275_v4 = vld [vmem:[#allocation2 + $0x8] sm:$0x7f]  ;;  %p774_p13 = pnand %p773_p12, %p923_p4  ;;  %s776_s8 = sshll.u32 %s852_s21, 4  ;;  %s777_s8 = int_to_ptr.vmem [resolvable:$false] %s776_s8 }
  0x1d   : > { %v279_v7 = vadd.f32 %v277_v3, %v275_v4  ;;  %v303_v14 = vadd.f32 %v302_v13, %v301_v11  ;;  %s778_s9 = scalar_lea.vmem %s777_s8, 256  ;;  %p779_p1 = scmp.lt.s32.totalorder %s590_s17, %s777_s8 }
  0x1e   : > { %p775_p0 = pneg %p774_p13  ;;  %p780_p2 = scmp.lt.s32.totalorder %s778_s9, %s772_s7 }
  0x1f   : > { %v283_v8 = vadd.f32 %v281_v5, %v279_v7  ;;  %v304_v15 = vrot.slane %v303_v14, 2 }
  0x20   : > { %p781_p3 = por %p780_p2, %p779_p1 }
  0x21   : > { %285 = vst [vmem:[#allocation2 + $0x8] sm:$0x7f] %v283_v8  ;;  %v305_v16 = vadd.f32 %v304_v15, %v303_v14 }
  0x22   : > { %p782_p5 = pnand %p781_p3, %p775_p0 }
  0x23   : > { %v306_v17 = vrot.slane %v305_v16, 1 }
  0x25   : > { %v307_v19 = vadd.f32 %v306_v17, %v305_v16 }
  0x27   : > { %v309_v22 = vmul.f32 0.125, %v307_v19 }
  0x28   : > { %v290_v10 = vld [vmem:[#allocation2 + $0x8] sm:$0x7f] }
  0x29   : > { %v294_v12 = vsel %vm293_vm0, %v290_v10, 0.0  ;;  %706 = vmatmul.mubr.msk.f32.vlgmr.msra.gmra.mxu0 %vm300_vm1, %v309_v22 }
  0x2a   : > { %295 = vadd.xlane.f32.xlu0 %v294_v12  ;;  %557 = vmatprep.mubr.f32.mxu0 %v850_v0 }
  0x2b   : > { %688 = vmatpush1.msk.msra.mxu0 %vm293_vm0, %v481_v40 }
  0xa4   : > { %v292_v26 = vpop.xlane.xlu0 %291 }
  0xa5   : > { %v297_v30 = vmul.f32 0.00390625, %v292_v26 }
  0xa7   : > { %v397_v34 = vrot.slane %v297_v30, %v396_v29 }
  0xb3   : > { %v296_v32 = vpop.xlane.xlu0 %295 }
  0xb4   : > { %v298_v33 = vmul.f32 0.00390625, %v296_v32 }
  0xb6   : > { %v402_v35 = vrot.slane %v298_v33, %v401_v31 }
  0xb8   : > { %v404_v36 = vsel %vm403_vm3, %v402_v35, %v397_v34 }
  0xb9   : > { %713 = vmatmul.mubr.msk.f32.vlgmr.msra.gmra.mxu1 %vm300_vm1, %v404_v36 }
  0xe9   : > { %v386_v37 = vpop.f32.mrf.mxu0 }
  0xeb   : > { %v707_v38 = vpop.f32.mrf.mxu0 }
 0x179   : > { %v476_v41 = vpop.f32.mrf.mxu1 }
 0x17a   : > { %v477_v42 = vadd.f32 %v476_v41, %v386_v37 }
 0x17b   : > { %v714_v43 = vpop.f32.mrf.mxu1 }
 0x17c   : > { %v480_v44 = vmax.f32 %v477_v42, 0.0 }
 0x17e   : > { %689 = vmatmul.mubr.msk.f32.vlgmr.msra.gmra.mxu0 %vm483_vm4, %v480_v44 }
 0x23e   : > { %v559_v46 = vpop.f32.mrf.mxu0 }
 0x23f   : > { %v567_v47 = vrot.slane %v559_v46, %v566_v45 }
 0x240   : > { %v561_v48 = vpop.f32.mrf.mxu0 }
 0x241   : > { %v568_v49 = vmul.f32 %v567_v47, %v946_v9  ;;  %v572_v50 = vrot.slane %v561_v48, %v566_v45 }
 0x243   : > { %v573_v51 = vadd.f32 %v572_v50, %v568_v49 }
 0x245   : > { %574 = vst.msk [vmem:[%s253_s16] sm:$0xff] %vm300_vm1, %v573_v51 }
 0x246   : > { %785 = shalt.err (!%p782_p5)
}
 0x247   : > { %s786_s10 = scalar_lea.hbm %s587_s27, 128  ;;  %s790_s13 = scalar_lea.hbm %s1021_s5, 256 }
 0x248   : > { %p787_p6 = scmp.ne.s32.totalorder %s587_s27, %s786_s10  ;;  %p791_p10 = scmp.lt.s32.totalorder %s587_s27, %s1021_s5 }
 0x249   : > { %p792_p11 = scmp.lt.s32.totalorder %s790_s13, %s786_s10 }
 0x24a   : > { %p788_p7 = pnand %p787_p6, %p923_p4 }
 0x24b   : > { %p793_p12 = por %p792_p11, %p791_p10 }
 0x24c   : > { %p789_p9 = pneg %p788_p7 }
 0x24e   : > { %p794_p13 = pnand %p793_p12, %p789_p9 }
 0x250   : > { %797 = shalt.err (!%p794_p13)
}
 0x251   : > { %715 = dma.vmem_to_hbm [thread:$0]  (%p923_p4), %s590_s17, 128, %s587_s27, %s576_s29  }
 0x252 PF: > { %p721_p0 = scmp.ge.s32.totalorder %s848_s23, 2  ;;  %s601_s16 = sand.u32 1, %s828_s18  }
 0x253   : > { %s602_s24 = scalar_lea.sflag [#allocation4], %s601_s16 }
 0x254   : > { %p718_p1 = pnand %p721_p0, %p930_p8 }
 0x256   : > { %p719_p2 = pneg %p718_p1 }
 0x258   : > { %823 = dma.done.wait (%p719_p2), %s602_s24, 128  }
 0x259   : > { %825 = vsyncadd (%p719_p2), %s602_s24, 4294967168  ;;  %s18_s23 = sadd.s32 1, %s848_s23   ;;  %s1024_s18 = smov %s832_s19 }
 0x25a   : > { %p15_p3 = scmp.ge.s32.totalorder %s18_s23, 4   ;;  %s1025_s19 = smov %s836_s20 }
 0x25b   : > { %s1026_s20 = smov %s936_s6  ;;  %s1027_s21 = smov %s844_s22 }
 0x25c   : > { %s1028_s22 = smov %s1030_s26  ;;  %17 = sbr.rel (!%p15_p3) target bundleno = 4 (0x4), region = 86 }
 0x261   :  { %607 = vsyncpa [#allocation4], 1 }
 0x262   :  { %609 = vsyncpa [#allocation4 + $0x1], 1 }

</bundles_post_ra>
